<compile_context>
chip_gen: v5e
topology: v5e:2x2
jax: 0.10.0
libtpu: 0.0.40
codegen_flags: <defaults>
</compile_context>

<pallas_src>
import functools

import numpy as np

import jax
import jax.numpy as jnp
from jax.experimental import pallas as pl
from jax.experimental.pallas import tpu as pltpu


def _yolo_loss_kernel(pred_ref, tgt_ref, w_obj_ref, w_noobj_ref, out_ref,
                      acc_ref):
    i = pl.program_id(0)

    @pl.when(i == 0)
    def _init():
        acc_ref[...] = jnp.zeros_like(acc_ref)

    pred = pred_ref[...].astype(jnp.float32)      # (N, TM)
    tgt = tgt_ref[...].astype(jnp.float32)        # (N, TM)
    sq = (pred - tgt) * (pred - tgt)

    # object / no-object cell masks from bbox-0's confidence row (row 4),
    # exactly like target[:, :, :, 4] > 0 / == 0 in the PyTorch reference.
    conf0 = tgt[4:5, :]                           # (1, TM)
    obj = (conf0 > 0).astype(jnp.float32)         # (1, TM)
    noobj = (conf0 == 0).astype(jnp.float32)      # (1, TM)

    # constant per-feature weights (already include lambda_coord/lambda_noobj)
    w_obj = w_obj_ref[...]                        # (N, 1)
    w_noobj = w_noobj_ref[...]                    # (N, 1)
    weight = obj * w_obj + noobj * w_noobj        # (N, TM) via broadcast

    acc_ref[...] += sq * weight                   # elementwise, defer reduce

    @pl.when(i == pl.num_programs(0) - 1)
    def _finalize():
        out_ref[0, 0] = jnp.sum(acc_ref[...])     # single XLU reduce at end


def _round_up(x, m):
    return ((x + m - 1) // m) * m


def _column_weights(B, C, lambda_coord, lambda_noobj):
    """Trace-time constant (N,1) weight vectors for obj / noobj cells."""
    N = 5 * B + C
    idx = np.arange(N)
    in_bbox = idx < 5 * B
    rem = idx % 5
    xy = in_bbox & (rem < 2)
    wh = in_bbox & (rem >= 2) & (rem < 4)
    conf = in_bbox & (rem == 4)
    cls = idx >= 5 * B
    w_obj = (lambda_coord * (xy.astype(np.float32) + wh.astype(np.float32))
             + conf.astype(np.float32) + cls.astype(np.float32))
    w_noobj = lambda_noobj * conf.astype(np.float32)
    return (jnp.asarray(w_obj, jnp.float32).reshape(N, 1),
            jnp.asarray(w_noobj, jnp.float32).reshape(N, 1))


def yolo_loss(pred, target, *, S=7, B=2, C=3,
              lambda_coord=0.5, lambda_noobj=0.5, block_m=65536):
    """pred/target: [batch, S, S, 5*B+C] float arrays. Returns scalar loss.

    bf16 inputs are accepted (cast to f32 inside the kernel)."""
    N = 5 * B + C
    assert pred.shape[-1] == N and target.shape == pred.shape
    bs = pred.shape[0]
    M = bs * S * S

    # lane-dense (N, M) layout + pad M up to a multiple of the tile width.
    # Padded cells have pred == target == 0, so they contribute exactly 0.
    tm = min(block_m, _round_up(M, 128))
    m_pad = _round_up(M, tm)
    num_tiles = m_pad // tm

    pred2 = jnp.transpose(pred.reshape(M, N))     # (N, M)
    tgt2 = jnp.transpose(target.reshape(M, N))    # (N, M)
    if m_pad != M:
        pred2 = jnp.pad(pred2, ((0, 0), (0, m_pad - M)))
        tgt2 = jnp.pad(tgt2, ((0, 0), (0, m_pad - M)))

    w_obj, w_noobj = _column_weights(B, C, lambda_coord, lambda_noobj)

    itemsize = jnp.dtype(pred.dtype).itemsize
    cost = pl.CostEstimate(
        flops=7 * m_pad * N,
        transcendentals=0,
        bytes_accessed=2 * m_pad * N * itemsize + 4,
    )

    out = pl.pallas_call(
        _yolo_loss_kernel,
        out_shape=jax.ShapeDtypeStruct((1, 1), jnp.float32),
        grid_spec=pltpu.PrefetchScalarGridSpec(
            num_scalar_prefetch=0,
            grid=(num_tiles,),
            in_specs=[
                pl.BlockSpec((N, tm), lambda i: (0, i)),
                pl.BlockSpec((N, tm), lambda i: (0, i)),
                pl.BlockSpec((N, 1), lambda i: (0, 0)),
                pl.BlockSpec((N, 1), lambda i: (0, 0)),
            ],
            out_specs=pl.BlockSpec(memory_space=pltpu.MemorySpace.SMEM),
            scratch_shapes=[pltpu.VMEM((N, tm), jnp.float32)],
        ),
        compiler_params=pltpu.CompilerParams(
            dimension_semantics=("arbitrary",),
            vmem_limit_bytes=40 * 1024 * 1024,
        ),
        cost_estimate=cost,
    )(pred2, tgt2, w_obj, w_noobj)
    return out[0, 0]


def yolo_loss_ref(pred, target, *, S=7, B=2, C=3,
                  lambda_coord=0.5, lambda_noobj=0.5):
    """Pure-JAX reference mirroring the (intended) PyTorch semantics."""
    N = 5 * B + C
    p = pred.reshape(-1, N).astype(jnp.float32)
    t = target.reshape(-1, N).astype(jnp.float32)
    obj = (t[:, 4] > 0).astype(jnp.float32)[:, None]
    noobj = (t[:, 4] == 0).astype(jnp.float32)[:, None]
    sq = (p - t) ** 2
    conf_cols = jnp.zeros((N,)).at[jnp.array([b * 5 + 4 for b in range(B)])].set(1.0)
    xy_cols = jnp.zeros((N,)).at[jnp.array(sum([[b * 5, b * 5 + 1] for b in range(B)], []))].set(1.0)
    wh_cols = jnp.zeros((N,)).at[jnp.array(sum([[b * 5 + 2, b * 5 + 3] for b in range(B)], []))].set(1.0)
    cls_cols = jnp.zeros((N,)).at[jnp.arange(5 * B, N)].set(1.0)
    loss_noobj = jnp.sum(sq * noobj * conf_cols)
    loss_xy = jnp.sum(sq * obj * xy_cols)
    loss_wh = jnp.sum(sq * obj * wh_cols)
    loss_conf = jnp.sum(sq * obj * conf_cols)
    loss_cls = jnp.sum(sq * obj * cls_cols)
    return (lambda_coord * (loss_xy + loss_wh) + loss_conf
            + lambda_noobj * loss_noobj + loss_cls)


if __name__ == "__main__":
    S, B, C = 7, 2, 3
    N = 5 * B + C
    batch = 2

    key = jax.random.PRNGKey(0)
    k_pred, k_tgt, k_conf = jax.random.split(key, 3)

    pred = jax.random.normal(k_pred, (batch, S, S, N), dtype=jnp.float32)

    # target: uniform features in [0,1), confidence of bbox-0 forced to {0,1}
    target = jax.random.uniform(k_tgt, (batch, S, S, N), dtype=jnp.float32)
    conf_bits = jax.random.bernoulli(k_conf, 0.4, (batch, S, S)).astype(jnp.float32)
    target = target.at[..., 4].set(conf_bits)

    loss = yolo_loss(pred, target, S=S, B=B, C=C)
    loss = jax.block_until_ready(loss)

    ref = yolo_loss_ref(pred, target, S=S, B=B, C=C)
    assert jnp.allclose(loss, ref, rtol=1e-5, atol=1e-4), (loss, ref)

    print("KERNEL_OK")
</pallas_src>

<mosaic_0001>
module attributes {stable_mosaic.version = 11 : i64} {
  func.func @_yolo_loss_kernel(%arg0: i32, %arg1: memref<13x128xf32, #tpu.memory_space<vmem>>, %arg2: memref<13x128xf32, #tpu.memory_space<vmem>>, %arg3: memref<13x1xf32, #tpu.memory_space<vmem>>, %arg4: memref<13x1xf32, #tpu.memory_space<vmem>>, %arg5: memref<1x1xf32, #tpu.memory_space<smem>>, %arg6: memref<13x128xf32, #tpu.memory_space<vmem>>) attributes {dimension_semantics = [#tpu.dimension_semantics<arbitrary>], iteration_bounds = array<i64: 1>, scalar_prefetch = 0 : i64, scratch_operands = 1 : i64, tpu.core_type = #tpu.core_type<tc>, window_params = [{transform_indices = @transform_0, window_bounds = array<i64: 13, 128>}, {transform_indices = @transform_1, window_bounds = array<i64: 13, 128>}, {pipeline_mode = #tpu.pipeline_mode<synchronous>, transform_indices = @transform_2, window_bounds = array<i64: 13, 1>}, {pipeline_mode = #tpu.pipeline_mode<synchronous>, transform_indices = @transform_3, window_bounds = array<i64: 13, 1>}, {transform_indices = @transform_4, window_bounds = array<i64: 1, 1>}]} {
    %c0_i32 = arith.constant 0 : i32
    %0 = arith.cmpi eq, %arg0, %c0_i32 : i32
    %1 = arith.extui %0 : i1 to i32
    %c0_i32_0 = arith.constant 0 : i32
    %2 = arith.cmpi ne, %1, %c0_i32_0 : i32
    scf.if %2 {
      %cst_15 = arith.constant 0.000000e+00 : f32
      %33 = vector.broadcast %cst_15 : f32 to vector<13x128xf32>
      %c0_16 = arith.constant 0 : index
      %c0_17 = arith.constant 0 : index
      %34 = vector.load %arg6[%c0_16, %c0_17] : memref<13x128xf32, #tpu.memory_space<vmem>>, vector<13x128xf32>
      tpu.vector_store %arg6[%c0_16, %c0_17], %33 {strides = array<i32>} : memref<13x128xf32, #tpu.memory_space<vmem>>, vector<13x128xf32>,
    } else {
    }
    %c0 = arith.constant 0 : index
    %c0_1 = arith.constant 0 : index
    %3 = vector.load %arg1[%c0, %c0_1] : memref<13x128xf32, #tpu.memory_space<vmem>>, vector<13x128xf32>
    %c0_2 = arith.constant 0 : index
    %c0_3 = arith.constant 0 : index
    %4 = vector.load %arg2[%c0_2, %c0_3] : memref<13x128xf32, #tpu.memory_space<vmem>>, vector<13x128xf32>
    %5 = arith.subf %3, %4 : vector<13x128xf32>
    %6 = arith.subf %3, %4 : vector<13x128xf32>
    %7 = arith.mulf %5, %6 : vector<13x128xf32>
    %8 = vector.extract_strided_slice %4 {offsets = [4, 0], sizes = [1, 128], strides = [1, 1]} : vector<13x128xf32> to vector<1x128xf32>
    %cst = arith.constant 0.000000e+00 : f32
    %9 = vector.broadcast %cst : f32 to vector<1x128xf32>
    %10 = arith.cmpf ogt, %8, %9 : vector<1x128xf32>
    %11 = arith.extui %10 : vector<1x128xi1> to vector<1x128xi32>
    %12 = arith.sitofp %11 : vector<1x128xi32> to vector<1x128xf32>
    %cst_4 = arith.constant 0.000000e+00 : f32
    %13 = vector.broadcast %cst_4 : f32 to vector<1x128xf32>
    %14 = arith.cmpf oeq, %8, %13 : vector<1x128xf32>
    %15 = arith.extui %14 : vector<1x128xi1> to vector<1x128xi32>
    %16 = arith.sitofp %15 : vector<1x128xi32> to vector<1x128xf32>
    %c0_5 = arith.constant 0 : index
    %c0_6 = arith.constant 0 : index
    %17 = vector.load %arg3[%c0_5, %c0_6] : memref<13x1xf32, #tpu.memory_space<vmem>>, vector<13x1xf32>
    %c0_7 = arith.constant 0 : index
    %c0_8 = arith.constant 0 : index
    %18 = vector.load %arg4[%c0_7, %c0_8] : memref<13x1xf32, #tpu.memory_space<vmem>>, vector<13x1xf32>
    %19 = vector.broadcast %12 : vector<1x128xf32> to vector<13x128xf32>
    %20 = vector.broadcast %17 : vector<13x1xf32> to vector<13x128xf32>
    %21 = arith.mulf %19, %20 : vector<13x128xf32>
    %22 = vector.broadcast %16 : vector<1x128xf32> to vector<13x128xf32>
    %23 = vector.broadcast %18 : vector<13x1xf32> to vector<13x128xf32>
    %24 = arith.mulf %22, %23 : vector<13x128xf32>
    %25 = arith.addf %21, %24 : vector<13x128xf32>
    %c0_9 = arith.constant 0 : index
    %c0_10 = arith.constant 0 : index
    %26 = vector.load %arg6[%c0_9, %c0_10] : memref<13x128xf32, #tpu.memory_space<vmem>>, vector<13x128xf32>
    %27 = arith.mulf %7, %25 : vector<13x128xf32>
    %28 = arith.addf %26, %27 : vector<13x128xf32>
    %c0_11 = arith.constant 0 : index
    %c0_12 = arith.constant 0 : index
    %29 = vector.load %arg6[%c0_11, %c0_12] : memref<13x128xf32, #tpu.memory_space<vmem>>, vector<13x128xf32>
    tpu.vector_store %arg6[%c0_11, %c0_12], %28 {strides = array<i32>} : memref<13x128xf32, #tpu.memory_space<vmem>>, vector<13x128xf32>,
    %c0_i32_13 = arith.constant 0 : i32
    %30 = arith.cmpi eq, %arg0, %c0_i32_13 : i32
    %31 = arith.extui %30 : i1 to i32
    %c0_i32_14 = arith.constant 0 : i32
    %32 = arith.cmpi ne, %31, %c0_i32_14 : i32
    scf.if %32 {
      %c0_15 = arith.constant 0 : index
      %c0_16 = arith.constant 0 : index
      %33 = vector.load %arg6[%c0_15, %c0_16] : memref<13x128xf32, #tpu.memory_space<vmem>>, vector<13x128xf32>
      %34 = vector.shape_cast %33 : vector<13x128xf32> to vector<1x13x128xf32>
      %cst_17 = arith.constant dense<0.000000e+00> : vector<1xf32>
      %35 = vector.multi_reduction <add>, %34, %cst_17 [1, 2] : vector<1x13x128xf32> to vector<1xf32>
      %36 = vector.shape_cast %35 : vector<1xf32> to vector<1x1x1xf32>
      %37 = vector.extract %36[0, 0, 0] : f32 from vector<1x1x1xf32>
      %c0_18 = arith.constant 0 : index
      %c0_19 = arith.constant 0 : index
      %38 = memref.load %arg5[%c0_18, %c0_19] : memref<1x1xf32, #tpu.memory_space<smem>>
      memref.store %37, %arg5[%c0_18, %c0_19] : memref<1x1xf32, #tpu.memory_space<smem>>
    } else {
    }
    return
  }
  func.func @transform_0(%arg0: i32) -> (i32, i32) {
    %c0_i32 = arith.constant 0 : i32
    %c0_i32_0 = arith.constant 0 : i32
    return %c0_i32, %arg0 : i32, i32
  }
  func.func @transform_1(%arg0: i32) -> (i32, i32) {
    %c0_i32 = arith.constant 0 : i32
    %c0_i32_0 = arith.constant 0 : i32
    return %c0_i32, %arg0 : i32, i32
  }
  func.func @transform_2(%arg0: i32) -> (i32, i32) {
    %c0_i32 = arith.constant 0 : i32
    %c0_i32_0 = arith.constant 0 : i32
    %c0_i32_1 = arith.constant 0 : i32
    return %c0_i32, %c0_i32_0 : i32, i32
  }
  func.func @transform_3(%arg0: i32) -> (i32, i32) {
    %c0_i32 = arith.constant 0 : i32
    %c0_i32_0 = arith.constant 0 : i32
    %c0_i32_1 = arith.constant 0 : i32
    return %c0_i32, %c0_i32_0 : i32, i32
  }
  func.func @transform_4(%arg0: i32) -> (i32, i32) {
    %c0_i32 = arith.constant 0 : i32
    %c0_i32_0 = arith.constant 0 : i32
    %c0_i32_1 = arith.constant 0 : i32
    return %c0_i32, %c0_i32_0 : i32, i32
  }
}

</mosaic_0001>

<bundles_post_ra>
// kernel: tpu_custom_call.1
= control target key start
LH: loop header
LB: loop body
LE: loop exit
PB: predicated region body
PF: predicated region fallthrough
CT: control target
= control target key end

     0   :  { %v135_v2 = vmov 0   ;;  %s190_s0 = inlined_call_operand.vmem [shape: f32[13,128], index: 0, kind: input, shape index: {}]   ;;  %s191_s1 = inlined_call_operand.vmem [shape: f32[13,128], index: 1, kind: input, shape index: {}]   ;;  %s192_s2 = inlined_call_operand.vmem [shape: f32[13,1], index: 2, kind: input, shape index: {}]   ;;  %s193_s3 = inlined_call_operand.vmem [shape: f32[13,1], index: 3, kind: input, shape index: {}]   ;;  %s194_s4 = inlined_call_operand.hbm [shape: f32[1,1], index: 4, kind: output, shape index: {}]  }
   0x1   :  { %v39_v0 = vld [vmem:[%s192_s2 + $0x8] sm:$0x1f]  ;;  %v38_v1 = vld [vmem:[%s192_s2] sm:$0xff]  ;;  %120 = vset.pattern.permute.xlu1 %v135_v2  ;;  %119 = vset.pattern.permute.xlu0 %v135_v2 }
   0x2   :  { %9 = vsyncpa [#allocation4], 0  ;;  %50 = vperm.xlu0 %119, %v39_v0   ;;  %45 = vperm.xlu1 %120, %v38_v1   ;;  %v41_v3 = vld [vmem:[%s193_s3 + $0x8] sm:$0x1f]  ;;  %v40_v4 = vld [vmem:[%s193_s3] sm:$0xff]  ;;  %v136_v5 = vmov 0.0  }
   0x3   :  { %23 = vst [vmem:[#allocation2 + $0x8] sm:$0x1f] %v136_v5  ;;  %v26_v6 = vld [vmem:[%s191_s1] sm:$0xff]  ;;  %v25_v9 = vld [vmem:[%s190_s0 + $0x8] sm:$0x1f]  ;;  %vm83_vm2 = vcmask 1044480  }
   0x4   :  { %vm32_vm0 = vcmp.gt.f32.partialorder %v26_v6, 0.0  ;;  %vm35_vm1 = vcmp.eq.f32.partialorder %v26_v6, 0.0  ;;  %v27_v10 = vld [vmem:[%s191_s1 + $0x8] sm:$0x1f]  ;;  %v24_v13 = vld [vmem:[%s190_s0] sm:$0xff]  ;;  %s102_s29 = sshll.u32 %s194_s4, 4  ;;  %s103_s29 = int_to_ptr.hbm [resolvable:$true] %s102_s29 }
   0x5   :  { %v112_v11 = vsel %vm32_vm0, 1.0, %v136_v5  ;;  %v113_v12 = vsel %vm35_vm1, 1.0, %v136_v5  ;;  %v29_v14 = vsub.f32 %v25_v9, %v27_v10  ;;  %v28_v17 = vsub.f32 %v24_v13, %v26_v6  ;;  %s137_s5 = smov [#allocation3]  }
   0x6   :  { %v42_v15 = vperm.slane %v112_v11, 4  ;;  %v55_v16 = vperm.slane %v113_v12, 4 }
   0x7   :  { %v31_v20 = vmul.f32 %v29_v14, %v29_v14  ;;  %v30_v24 = vmul.f32 %v28_v17, %v28_v17 }
   0xa   :  { %63 = vperm.xlu0 %119, %v41_v3   ;;  %58 = vperm.xlu1 %120, %v40_v4   ;;  %v71_v28 = vld [vmem:[#allocation2 + $0x8] sm:$0x1f] }
  0x74   :  { %v51_v7 = vpop.permute.xlu0 %50  ;;  %v46_v8 = vpop.permute.xlu1 %45 }
  0x75   :  { %v53_v18 = vmul.f32 %v46_v8, %v42_v15  ;;  %v54_v22 = vmul.f32 %v51_v7, %v42_v15 }
  0x7c   :  { %v64_v19 = vpop.permute.xlu0 %63  ;;  %v59_v21 = vpop.permute.xlu1 %58 }
  0x7d   :  { %v67_v23 = vmul.f32 %v64_v19, %v55_v16  ;;  %v66_v25 = vmul.f32 %v59_v21, %v55_v16 }
  0x7f   :  { %v69_v26 = vadd.f32 %v67_v23, %v54_v22  ;;  %v68_v27 = vadd.f32 %v66_v25, %v53_v18 }
  0x81   :  { %v73_v29 = vmul.f32 %v69_v26, %v31_v20  ;;  %v72_v30 = vmul.f32 %v68_v27, %v30_v24 }
  0x83   :  { %v75_v31 = vadd.f32 %v73_v29, %v71_v28 }
  0x85   :  { %77 = vst [vmem:[#allocation2 + $0x8] sm:$0x1f] %v75_v31 }
  0x8c   :  { %v82_v32 = vld [vmem:[#allocation2 + $0x8] sm:$0x1f] }
  0x8d   :  { %v84_v33 = vsel %vm83_vm2, %v82_v32, 0.0 }
  0x8e   :  { %v85_v34 = vadd.f32 %v84_v33, %v72_v30 }
  0x90   :  { %86 = vadd.xlane.f32.xlu2 %v85_v34 }
 0x103   :  { %v87_v35 = vpop.xlane.xlu2 %86 }
 0x104   :  { %v88_v36 = vrot.slane %v87_v35, 4 }
 0x106   :  { %v89_v37 = vadd.f32 %v88_v36, %v87_v35 }
 0x108   :  { %v90_v38 = vrot.slane %v89_v37, 2 }
 0x10a   :  { %v91_v39 = vadd.f32 %v90_v38, %v89_v37 }
 0x10c   :  { %v92_v40 = vrot.slane %v91_v39, 1 }
 0x10e   :  { %v93_v41 = vadd.f32 %v92_v40, %v91_v39 }
 0x110   :  { %114 = vpush %v93_v41 }
 0x141   :  { %s115_s30 = spop %114 }
 0x142   :  { %96 = sst [smem:[#allocation3]] %s115_s30 }
 0x143   :  { %105 = dma.smem_to_hbm %s137_s5, 16, %s103_s29, [#allocation4]  }
 0x144   :  { %133 = dma.done.wait [#allocation4], 16  }
 0x145   :  { %134 = vsyncadd [#allocation4], 4294967280 }
 0x146   :  { %110 = sfence }
 0x147   :  { %111 = vsyncpa [#allocation4], 1 }

</bundles_post_ra>
